<compile_context>
chip_gen: v6e
topology: v6e:2x2x1
jax: 0.10.0
libtpu: 0.0.40
codegen_flags: <defaults>
</compile_context>

<pallas_src>
import jax
import jax.numpy as jnp
from jax.experimental import pallas as pl
from jax.experimental.pallas import tpu as pltpu

F32 = jnp.float32
BF16 = jnp.bfloat16

VMEM_LIMIT = 32 << 20  # explicit scoped-VMEM limit on every pallas_call


def _round_up(x, m):
    return ((x + m - 1) // m) * m


def _const_spec(shape):
    """Full-array block with a constant index_map (weight stays resident)."""
    nd = len(shape)
    return pl.BlockSpec(shape, lambda *_: (0,) * nd)


# ---------------------------------------------------------------------------
# CentroidFC (the spec'd module): fc1 -> relu -> fc2
# ---------------------------------------------------------------------------
def _centroid_fc_kernel(tri_ref, w1_ref, b1_ref, w2_ref, b2_ref, out_ref):
    x = jnp.dot(tri_ref[...], w1_ref[...], preferred_element_type=F32) + b1_ref[...]
    x = jnp.maximum(x, 0.0).astype(BF16)
    out_ref[...] = jnp.dot(x, w2_ref[...], preferred_element_type=F32) + b2_ref[...]


def centroid_fc_forward(triangles, cfc_params, *, tm=512):
    """triangles: (F, n_dims*n_shapes) -> feature (F, 32)."""
    w1, b1, w2, b2 = cfc_params
    F_, D = triangles.shape
    TM = min(tm, _round_up(F_, 8))
    F_pad = _round_up(F_, TM)

    tri = jnp.pad(triangles.astype(BF16), ((0, F_pad - F_), (0, 0)))
    w1b, w2b = w1.astype(BF16), w2.astype(BF16)

    out = pl.pallas_call(
        _centroid_fc_kernel,
        out_shape=jax.ShapeDtypeStruct((F_pad, 32), F32),
        grid_spec=pltpu.PrefetchScalarGridSpec(
            num_scalar_prefetch=0,
            grid=(F_pad // TM,),
            in_specs=[
                pl.BlockSpec((TM, D), lambda i: (i, 0)),
                _const_spec(w1b.shape), _const_spec(b1.shape),
                _const_spec(w2b.shape), _const_spec(b2.shape),
            ],
            out_specs=pl.BlockSpec((TM, 32), lambda i: (i, 0)),
        ),
        compiler_params=pltpu.CompilerParams(
            dimension_semantics=("parallel",),
            vmem_limit_bytes=VMEM_LIMIT,
        ),
    )(tri, w1b, b1, w2b, b2)
    return out[:F_]


# ---------------------------------------------------------------------------
# Stage 1a: per-face term with CentroidFC folded in.
#   cent = CentroidFC(triangles);  jf = JacFC(j0)
#   face_term = jf @ w1j + cent @ w1c                 (F, 512) bf16
# ---------------------------------------------------------------------------
def _face_kernel(tri_ref, j0_ref,
                 cw1_ref, cb1_ref, cw2_ref, cb2_ref,
                 wj1_ref, bj1_ref, wj2_ref, bj2_ref,
                 w1j_ref, w1c_ref, face_ref):
    # CentroidFC (fc1 -> relu -> fc2), fused: cent never touches HBM.
    c = jnp.dot(tri_ref[...], cw1_ref[...], preferred_element_type=F32) + cb1_ref[...]
    c = jnp.maximum(c, 0.0).astype(BF16)
    cent = (jnp.dot(c, cw2_ref[...], preferred_element_type=F32)
            + cb2_ref[...]).astype(BF16)

    # JacFC on the flattened j0.
    h = jnp.dot(j0_ref[...].astype(BF16), wj1_ref[...],
                preferred_element_type=F32) + bj1_ref[...]
    h = jnp.maximum(h, 0.0).astype(BF16)
    jf = (jnp.dot(h, wj2_ref[...], preferred_element_type=F32)
          + bj2_ref[...]).astype(BF16)

    face_ref[...] = (
        jnp.dot(jf, w1j_ref[...], preferred_element_type=F32)
        + jnp.dot(cent, w1c_ref[...], preferred_element_type=F32)
    ).astype(BF16)


# ---------------------------------------------------------------------------
# Stage 1b: per-time term.  time_term = pose @ w1p + b1   (T, 512) bf16
# ---------------------------------------------------------------------------
def _time_kernel(pose_ref, w1p_ref, b1_ref, time_ref):
    time_ref[...] = (
        jnp.dot(pose_ref[...], w1p_ref[...], preferred_element_type=F32)
        + b1_ref[...]
    ).astype(BF16)


# ---------------------------------------------------------------------------
# Stage 2: broadcast add (bf16) + relu + fc2..fc4 + residual, T-major output.
# Grid = (ti, fi): time tile resident across the inner face sweep.
# ---------------------------------------------------------------------------
def _combine_kernel(time_ref, face_ref, j0_ref,
                    w2_ref, b2_ref, w3_ref, b3_ref, w4_ref, b4_ref, out_ref):
    TT, D1 = time_ref.shape
    TF = face_ref.shape[0]
    JD = j0_ref.shape[1]

    # bf16 outer combination of the per-time and per-face fc1 halves.
    x = jnp.maximum(time_ref[...][:, None, :] + face_ref[...][None, :, :], 0.0)
    x = x.reshape(TT * TF, D1)                     # bf16 rows for the MXU

    h = jnp.dot(x, w2_ref[...], preferred_element_type=F32) + b2_ref[...]
    h = jnp.maximum(h, 0.0).astype(BF16)
    h = jnp.dot(h, w3_ref[...], preferred_element_type=F32) + b3_ref[...]
    h = jnp.maximum(h, 0.0).astype(BF16)
    dj = jnp.dot(h, w4_ref[...], preferred_element_type=F32) + b4_ref[...]

    # Time-major store with the f32 residual: no host-side transpose needed.
    out_ref[...] = dj.reshape(TT, TF, JD) + j0_ref[...][None, :, :]


# ---------------------------------------------------------------------------
# Wrapper: PosingNetwork-style forward (CentroidFC folded in).
# ---------------------------------------------------------------------------
def posing_network_forward(j0, triangles, pose_joints, params, cfc_params,
                           *, tf=16, tt=256, tm_face=512):
    """j0: (F,3,3)  triangles: (F,Dtri)  pose_joints: (T,156) -> (T,F,3,3)."""
    (wj1, bj1, wj2, bj2, w1j, w1c, w1p, b1, w2, b2, w3, b3, w4, b4) = params
    cw1, cb1, cw2, cb2 = cfc_params

    F_ = j0.shape[0]
    T_ = pose_joints.shape[0]
    tri_dim = triangles.shape[1]
    p_dim = pose_joints.shape[1]
    d1 = b1.shape[1]                                   # fc1 width (512)

    # bf16 copies of matmul operands; biases / residual stay f32.
    cw1b, cw2b = cw1.astype(BF16), cw2.astype(BF16)
    wj1b, wj2b = wj1.astype(BF16), wj2.astype(BF16)
    w1jb, w1cb, w1pb = w1j.astype(BF16), w1c.astype(BF16), w1p.astype(BF16)
    w2b, w3b, w4b = w2.astype(BF16), w3.astype(BF16), w4.astype(BF16)

    # Tile selection.  Stage-2 face/time tiles (TF, TT) are sublane-aligned and
    # capped; stage-1a face tile TM1 is a large multiple of TF (decoupled).
    TF = min(tf, _round_up(F_, 8))
    TT = min(tt, _round_up(T_, 8))
    TM1 = _round_up(min(tm_face, _round_up(F_, 8)), TF)

    F_pad1 = _round_up(F_, TM1)        # rows produced by stage 1a
    F_pad2 = _round_up(F_, TF)         # rows consumed by stage 2 (<= F_pad1)
    T_pad = _round_up(T_, TT)

    flat_j0 = j0.reshape(F_, 9).astype(F32)
    j0_p = jnp.pad(flat_j0, ((0, F_pad1 - F_), (0, 0)))
    tri_p = jnp.pad(triangles.astype(BF16), ((0, F_pad1 - F_), (0, 0)))
    pose_p = jnp.pad(pose_joints.astype(BF16), ((0, T_pad - T_), (0, 0)))

    # ---- stage 1a: per-face term, big row tile, CentroidFC fused -----------
    face_term = pl.pallas_call(
        _face_kernel,
        out_shape=jax.ShapeDtypeStruct((F_pad1, d1), BF16),
        grid_spec=pltpu.PrefetchScalarGridSpec(
            num_scalar_prefetch=0,
            grid=(F_pad1 // TM1,),
            in_specs=[
                pl.BlockSpec((TM1, tri_dim), lambda i: (i, 0)),
                pl.BlockSpec((TM1, 9), lambda i: (i, 0)),
                _const_spec(cw1b.shape), _const_spec(cb1.shape),
                _const_spec(cw2b.shape), _const_spec(cb2.shape),
                _const_spec(wj1b.shape), _const_spec(bj1.shape),
                _const_spec(wj2b.shape), _const_spec(bj2.shape),
                _const_spec(w1jb.shape), _const_spec(w1cb.shape),
            ],
            out_specs=pl.BlockSpec((TM1, d1), lambda i: (i, 0)),
        ),
        compiler_params=pltpu.CompilerParams(
            dimension_semantics=("parallel",),
            vmem_limit_bytes=VMEM_LIMIT,
        ),
    )(tri_p, j0_p, cw1b, cb1, cw2b, cb2, wj1b, bj1, wj2b, bj2, w1jb, w1cb)

    # ---- stage 1b: per-time term (reads pose exactly once) -----------------
    time_term = pl.pallas_call(
        _time_kernel,
        out_shape=jax.ShapeDtypeStruct((T_pad, d1), BF16),
        grid_spec=pltpu.PrefetchScalarGridSpec(
            num_scalar_prefetch=0,
            grid=(T_pad // TT,),
            in_specs=[
                pl.BlockSpec((TT, p_dim), lambda i: (i, 0)),
                _const_spec(w1pb.shape), _const_spec(b1.shape),
            ],
            out_specs=pl.BlockSpec((TT, d1), lambda i: (i, 0)),
        ),
        compiler_params=pltpu.CompilerParams(
            dimension_semantics=("parallel",),
            vmem_limit_bytes=VMEM_LIMIT,
        ),
    )(pose_p, w1pb, b1)

    # ---- stage 2: (ti outer, fi inner) grid, T-major output ----------------
    # time_term's block index is constant across the inner fi sweep (resident);
    # face_term / j0 stream once per ti tile.  Both axes "parallel" so both
    # TensorCores get work when the grid has >1 tile along either axis.
    out = pl.pallas_call(
        _combine_kernel,
        out_shape=jax.ShapeDtypeStruct((T_pad, F_pad2, 9), F32),
        grid_spec=pltpu.PrefetchScalarGridSpec(
            num_scalar_prefetch=0,
            grid=(T_pad // TT, F_pad2 // TF),
            in_specs=[
                pl.BlockSpec((TT, d1), lambda ti, fi: (ti, 0)),
                pl.BlockSpec((TF, d1), lambda ti, fi: (fi, 0)),
                pl.BlockSpec((TF, 9), lambda ti, fi: (fi, 0)),
                _const_spec(w2b.shape), _const_spec(b2.shape),
                _const_spec(w3b.shape), _const_spec(b3.shape),
                _const_spec(w4b.shape), _const_spec(b4.shape),
            ],
            out_specs=pl.BlockSpec((TT, TF, 9), lambda ti, fi: (ti, fi, 0)),
        ),
        compiler_params=pltpu.CompilerParams(
            dimension_semantics=("parallel", "parallel"),
            vmem_limit_bytes=VMEM_LIMIT,
        ),
    )(time_term, face_term, j0_p, w2b, b2, w3b, b3, w4b, b4)

    # Already time-major: just slice off the padding and reshape.
    return out[:T_, :F_].reshape(T_, F_, 3, 3)


# ---------------------------------------------------------------------------
# Deterministic parameter init (PyTorch nn.Linear-style uniform(+-1/sqrt(fan_in)))
# ---------------------------------------------------------------------------
def _linear_init(key, fan_in, fan_out):
    kw, kb = jax.random.split(key)
    bound = 1.0 / jnp.sqrt(jnp.float32(fan_in))
    w = jax.random.uniform(kw, (fan_in, fan_out), F32, -bound, bound)
    b = jax.random.uniform(kb, (1, fan_out), F32, -bound, bound)
    return w, b


def init_posing_params(key):
    keys = jax.random.split(key, 6)
    wj1, bj1 = _linear_init(keys[0], 9, 64)      # JacFC fc1
    wj2, bj2 = _linear_init(keys[1], 64, 32)     # JacFC fc2
    w1, b1 = _linear_init(keys[2], 220, 512)     # fc1 over concat(32+32+156)
    w1j, w1c, w1p = w1[0:32], w1[32:64], w1[64:220]
    w2, b2 = _linear_init(keys[3], 512, 256)
    w3, b3 = _linear_init(keys[4], 256, 128)
    w4, b4 = _linear_init(keys[5], 128, 9)
    return (wj1, bj1, wj2, bj2, w1j, w1c, w1p, b1, w2, b2, w3, b3, w4, b4)


def init_centroid_params(key, n_dims=3, n_shapes=4):
    k1, k2 = jax.random.split(key)
    w1, b1 = _linear_init(k1, n_dims * n_shapes, 32)
    w2, b2 = _linear_init(k2, 32, 32)
    return (w1, b1, w2, b2)


# ---------------------------------------------------------------------------
# Pure-JAX (f32) references for correctness checks
# ---------------------------------------------------------------------------
def centroid_fc_reference(triangles, cfc_params):
    w1, b1, w2, b2 = cfc_params
    return jax.nn.relu(triangles @ w1 + b1[0]) @ w2 + b2[0]


def reference_forward(j0, triangles, pose_joints, params, cfc_params):
    (wj1, bj1, wj2, bj2, w1j, w1c, w1p, b1, w2, b2, w3, b3, w4, b4) = params
    cent_norm = centroid_fc_reference(triangles, cfc_params)
    F_, T_ = j0.shape[0], pose_joints.shape[0]
    flat_j0 = j0.reshape(F_, 9)
    j0r = jnp.broadcast_to(flat_j0[:, None, :], (F_, T_, 9))
    cr = jnp.broadcast_to(cent_norm[:, None, :], (F_, T_, cent_norm.shape[1]))
    pr = jnp.broadcast_to(pose_joints[None, :, :], (F_, T_, pose_joints.shape[1]))
    h = jax.nn.relu(j0r @ wj1 + bj1[0])
    jf = h @ wj2 + bj2[0]
    xt = jnp.concatenate([jf, cr, pr], axis=-1)
    w1 = jnp.concatenate([w1j, w1c, w1p], axis=0)
    x = jax.nn.relu(xt @ w1 + b1[0])
    x = jax.nn.relu(x @ w2 + b2[0])
    x = jax.nn.relu(x @ w3 + b3[0])
    dj = x @ w4 + b4[0]
    return (j0r + dj).reshape(F_, T_, 3, 3).transpose(1, 0, 2, 3)


if __name__ == "__main__":
    key = jax.random.PRNGKey(0)
    k_p, k_c, k_j0, k_tri, k_pj = jax.random.split(key, 5)

    posing_params = init_posing_params(k_p)
    cfc_params = init_centroid_params(k_c, n_dims=3, n_shapes=4)

    F_ = 2     # number of faces / j0 entries
    T_ = 8     # number of pose frames
    j0 = jax.random.normal(k_j0, (F_, 3, 3), F32)
    triangles = jax.random.normal(k_tri, (F_, 12), F32)    # CentroidFC input
    pose_joints = jax.random.normal(k_pj, (T_, 156), F32)

    # Standalone CentroidFC kernel (the spec'd module).
    cent_norm = jax.block_until_ready(
        jax.jit(centroid_fc_forward)(triangles, cfc_params))
    cent_ref = centroid_fc_reference(triangles, cfc_params)
    assert cent_norm.shape == (F_, 32)
    assert jnp.allclose(cent_norm, cent_ref, atol=3e-2, rtol=3e-2)

    # Fused PosingNetwork forward (CentroidFC folded into stage-1a, bf16 MXU
    # path, T-major kernel output) vs f32 reference.
    J = jax.block_until_ready(
        jax.jit(posing_network_forward)(
            j0, triangles, pose_joints, posing_params, cfc_params))
    J_ref = reference_forward(j0, triangles, pose_joints, posing_params, cfc_params)
    assert J.shape == (T_, F_, 3, 3)
    assert jnp.allclose(J, J_ref, atol=5e-2, rtol=5e-2)

    print("KERNEL_OK")
</pallas_src>

<mosaic_0001>
module attributes {stable_mosaic.version = 11 : i64} {
  func.func @_centroid_fc_kernel(%arg0: i32, %arg1: memref<8x12xbf16, #tpu.memory_space<vmem>>, %arg2: memref<12x32xbf16, #tpu.memory_space<vmem>>, %arg3: memref<1x32xf32, #tpu.memory_space<vmem>>, %arg4: memref<32x32xbf16, #tpu.memory_space<vmem>>, %arg5: memref<1x32xf32, #tpu.memory_space<vmem>>, %arg6: memref<8x32xf32, #tpu.memory_space<vmem>>) attributes {dimension_semantics = [#tpu.dimension_semantics<parallel>], iteration_bounds = array<i64: 1>, scalar_prefetch = 0 : i64, scratch_operands = 0 : i64, tpu.core_type = #tpu.core_type<tc>, window_params = [{transform_indices = @transform_0, window_bounds = array<i64: 8, 12>}, {pipeline_mode = #tpu.pipeline_mode<synchronous>, transform_indices = @transform_1, window_bounds = array<i64: 12, 32>}, {pipeline_mode = #tpu.pipeline_mode<synchronous>, transform_indices = @transform_2, window_bounds = array<i64: 1, 32>}, {pipeline_mode = #tpu.pipeline_mode<synchronous>, transform_indices = @transform_3, window_bounds = array<i64: 32, 32>}, {pipeline_mode = #tpu.pipeline_mode<synchronous>, transform_indices = @transform_4, window_bounds = array<i64: 1, 32>}, {transform_indices = @transform_5, window_bounds = array<i64: 8, 32>}]} {
    %c0 = arith.constant 0 : index
    %c0_0 = arith.constant 0 : index
    %0 = vector.load %arg1[%c0, %c0_0] : memref<8x12xbf16, #tpu.memory_space<vmem>>, vector<8x12xbf16>
    %c0_1 = arith.constant 0 : index
    %c0_2 = arith.constant 0 : index
    %1 = vector.load %arg2[%c0_1, %c0_2] : memref<12x32xbf16, #tpu.memory_space<vmem>>, vector<12x32xbf16>
    %cst = arith.constant dense<0.000000e+00> : vector<8x32xf32>
    %2 = tpu.matmul %0, %1, %cst {dimension_numbers = #tpu.dot_dimension_numbers<[1], [0], [0], [1], [0, 0, 1, 1], [], []>} : vector<8x12xbf16>, vector<12x32xbf16>, vector<8x32xf32> -> vector<8x32xf32>
    %c0_3 = arith.constant 0 : index
    %c0_4 = arith.constant 0 : index
    %3 = vector.load %arg3[%c0_3, %c0_4] : memref<1x32xf32, #tpu.memory_space<vmem>>, vector<1x32xf32>
    %4 = vector.broadcast %3 : vector<1x32xf32> to vector<8x32xf32>
    %5 = arith.addf %2, %4 : vector<8x32xf32>
    %cst_5 = arith.constant 0.000000e+00 : f32
    %6 = vector.broadcast %cst_5 : f32 to vector<8x32xf32>
    %7 = arith.maximumf %5, %6 : vector<8x32xf32>
    %8 = arith.truncf %7 : vector<8x32xf32> to vector<8x32xbf16>
    %c0_6 = arith.constant 0 : index
    %c0_7 = arith.constant 0 : index
    %9 = vector.load %arg4[%c0_6, %c0_7] : memref<32x32xbf16, #tpu.memory_space<vmem>>, vector<32x32xbf16>
    %cst_8 = arith.constant dense<0.000000e+00> : vector<8x32xf32>
    %10 = tpu.matmul %8, %9, %cst_8 {dimension_numbers = #tpu.dot_dimension_numbers<[1], [0], [0], [1], [0, 0, 1, 1], [], []>} : vector<8x32xbf16>, vector<32x32xbf16>, vector<8x32xf32> -> vector<8x32xf32>
    %c0_9 = arith.constant 0 : index
    %c0_10 = arith.constant 0 : index
    %11 = vector.load %arg5[%c0_9, %c0_10] : memref<1x32xf32, #tpu.memory_space<vmem>>, vector<1x32xf32>
    %12 = vector.broadcast %11 : vector<1x32xf32> to vector<8x32xf32>
    %13 = arith.addf %10, %12 : vector<8x32xf32>
    %c0_11 = arith.constant 0 : index
    %c0_12 = arith.constant 0 : index
    %14 = vector.load %arg6[%c0_11, %c0_12] : memref<8x32xf32, #tpu.memory_space<vmem>>, vector<8x32xf32>
    tpu.vector_store %arg6[%c0_11, %c0_12], %13 {strides = array<i32>} : memref<8x32xf32, #tpu.memory_space<vmem>>, vector<8x32xf32>,
    return
  }
  func.func @transform_0(%arg0: i32) -> (i32, i32) {
    %c0_i32 = arith.constant 0 : i32
    %c0_i32_0 = arith.constant 0 : i32
    return %arg0, %c0_i32 : i32, i32
  }
  func.func @transform_1(%arg0: i32) -> (i32, i32) {
    %c0_i32 = arith.constant 0 : i32
    %c0_i32_0 = arith.constant 0 : i32
    %c0_i32_1 = arith.constant 0 : i32
    return %c0_i32, %c0_i32_0 : i32, i32
  }
  func.func @transform_2(%arg0: i32) -> (i32, i32) {
    %c0_i32 = arith.constant 0 : i32
    %c0_i32_0 = arith.constant 0 : i32
    %c0_i32_1 = arith.constant 0 : i32
    return %c0_i32, %c0_i32_0 : i32, i32
  }
  func.func @transform_3(%arg0: i32) -> (i32, i32) {
    %c0_i32 = arith.constant 0 : i32
    %c0_i32_0 = arith.constant 0 : i32
    %c0_i32_1 = arith.constant 0 : i32
    return %c0_i32, %c0_i32_0 : i32, i32
  }
  func.func @transform_4(%arg0: i32) -> (i32, i32) {
    %c0_i32 = arith.constant 0 : i32
    %c0_i32_0 = arith.constant 0 : i32
    %c0_i32_1 = arith.constant 0 : i32
    return %c0_i32, %c0_i32_0 : i32, i32
  }
  func.func @transform_5(%arg0: i32) -> (i32, i32) {
    %c0_i32 = arith.constant 0 : i32
    %c0_i32_0 = arith.constant 0 : i32
    return %arg0, %c0_i32 : i32, i32
  }
}

</mosaic_0001>

<bundles_post_ra>
// kernel: centroid_fc_forward.1
= control target key start
LH: loop header
LB: loop body
LE: loop exit
PB: predicated region body
PF: predicated region fallthrough
CT: control target
= control target key end

     0   :  { %vm40_vm0 = vcmask 1045504   ;;  %v189_v0 = vmov 0.0   ;;  %vm190_vm1 = vmmov 0   ;;  %vm36_vm2 = vcmask 97280   ;;  %s242_s1 = inlined_call_operand.vmem [shape: bf16[12,32], index: 1, kind: input, shape index: {}]   ;;  %s243_s0 = inlined_call_operand.vmem [shape: bf16[8,12], index: 0, kind: input, shape index: {}]   ;;  %s244_s3 = inlined_call_operand.vmem [shape: bf16[32,32], index: 3, kind: input, shape index: {}]   ;;  %s245_s2 = inlined_call_operand.vmem [shape: f32[1,32], index: 2, kind: input, shape index: {}]   ;;  %s246_s4 = inlined_call_operand.vmem [shape: f32[1,32], index: 4, kind: input, shape index: {}]   ;;  %s247_s5 = inlined_call_operand.vmem [shape: f32[8,32], index: 5, kind: output, shape index: {}]  }
   0x1   :  { %170 = vmatprep.subr.bf16.mxu0 %v189_v0  ;;  %v186_v1 = vld [vmem:[%s242_s1] sm:$0x3f]   ;;  %172 = vmatprep.mubr.msk.bf16.mxu0 %vm190_vm1, %v189_v0  ;;  %v187_v4 = vld [vmem:[%s244_s3 + $0x8] sm:$0xff]   ;;  %vm109_vm3 = vcmask 261120  }
   0x2   :  { %176 = vmatprep.subr.bf16.mxu1 %v189_v0  ;;  %180 = vmatprep.mubr.msk.bf16.mxu1 %vm190_vm1, %v189_v0  ;;  %v42_v2 = vsel %vm40_vm0, %v186_v1, 0  ;;  %v21_v3 = vld [vmem:[%s243_s0] sm:$0xf] }
   0x3   :  { %171 = vmatpush3.bf16.msra.mxu0 %v42_v2  ;;  %177 = vmatpush3.bf16.msra.mxu1 %v187_v4  ;;  %v188_v5 = vld [vmem:[%s244_s3] sm:$0xff]  }
   0x4   :  { %178 = vmatprep.subr.bf16.mxu1 %v189_v0  ;;  %v158_v6 = vld [vmem:[%s245_s2] ss:$0 sm:$0xff] }
   0x5   :  { %v161_v14 = vld [vmem:[%s246_s4] ss:$0 sm:$0xff] }
   0x6   :  { %173 = vmatmul.mubr.msk.bf16.vlgmr.msra.gmra.mxu0 %vm36_vm2, %v21_v3 }
   0x7   :  { %179 = vmatpush3.bf16.msra.mxu1 %v188_v5 }
  0xc6   :  { %v78_v7 = vpop.f32.mrf.mxu0 }
  0xc7   :  { %v79_v8 = vadd.f32 %v158_v6, %v78_v7 }
  0xc8   :  { %v174_v9 = vpop.f32.mrf.mxu0 }
  0xc9   :  { %v84_v10 = vmax.f32 %v79_v8, 0.0 }
  0xca   :  { %v81_v11 = vpop.f32.mrf.mxu0 }
  0xcb   :  { %v85_v12 = vpack.c.bf16 %v84_v10, %v84_v10 }
  0xcc   :  { %v175_v13 = vpop.f32.mrf.mxu0 }
  0xcd   :  { %181 = vmatmul.mubr.msk.bf16.vlgmr.msra.gmra.mxu1 %vm109_vm3, %v85_v12 }
 0x18d   :  { %v147_v15 = vpop.f32.mrf.mxu1 }
 0x18e   :  { %v148_v16 = vadd.f32 %v161_v14, %v147_v15 }
 0x18f   :  { %v182_v17 = vpop.f32.mrf.mxu1 }
 0x190   :  { %153 = vst.msk [vmem:[%s247_s5] sm:$0xff] %vm109_vm3, %v148_v16 }
 0x191   :  { %v150_v18 = vpop.f32.mrf.mxu1 }
 0x193   :  { %v183_v19 = vpop.f32.mrf.mxu1 }

</bundles_post_ra>
